<compile_context>
chip_gen: v7x
topology: tpu7x:2x2x1
jax: 0.10.0
libtpu: 0.0.40
codegen_flags: <defaults>
</compile_context>

<pallas_src>
import functools

import jax
import jax.numpy as jnp
from jax.experimental import pallas as pl
from jax.experimental.pallas import tpu as pltpu


_ACT_DTYPE = jnp.bfloat16      # inter-stage activation storage (halves HBM bytes)
_MIN_PALLAS_HW = 256           # below this H*W, dispatch to the XLA conv path
_LANE_TILE_BUDGET = 24 << 20   # VMEM budget driving the lane-tile size (bytes)
_MAX_LANE_TILE = 8192          # hard cap on the lane tile (lanes)


def _cdiv(a, b):
    return -(-a // b)


def _round_up(a, b):
    return _cdiv(a, b) * b


# --------------------------------------------------------------------------
# Pallas kernel: fused 3x3 dilated conv (+ folded-BN bias) + ReLU over one
# lane tile of the flattened padded frame.  In-kernel im2col: the taps are
# static lane-offset slices of a single aligned dynamic load.
# --------------------------------------------------------------------------
def _rebnconv_kernel(cins, cout, tn, halo, offsets, *refs):
    # refs = (x_0 .. x_{n-1}, w_0 .. w_{n-1}, bias, out)
    #   x_i  : (Cin_i, Lin)      whole flattened padded image (VMEM resident)
    #   w_i  : (9, Cout, Cin_i)  per-tap weights, tap order (ky, kx)
    #   bias : (Cout, 1)         float32 (eval-mode BN folded in)
    #   out  : (Cout, tn)        activation dtype (lane-dense tile)
    n_in = len(cins)
    x_refs = refs[:n_in]
    w_refs = refs[n_in:2 * n_in]
    b_ref = refs[2 * n_in]
    o_ref = refs[2 * n_in + 1]

    j = pl.program_id(1)
    start = pl.multiple_of(j * tn, 128)        # tn is a multiple of 128
    cw = tn + 2 * halo

    acc = jnp.zeros((cout, tn), jnp.float32)
    for x_ref, w_ref, cin in zip(x_refs, w_refs, cins):
        # One aligned dynamic load of tile+halo; the 9 taps are then static
        # lane-offset slices of this value -- nothing touches HBM.
        chunk = x_ref[:, pl.ds(start, cw)]                     # (cin, tn+2halo)
        for t, off in enumerate(offsets):
            tap = chunk[:, off:off + tn]                       # (cin, tn)
            acc = acc + jnp.dot(w_ref[t], tap,
                                preferred_element_type=jnp.float32)

    out = jnp.maximum(acc + b_ref[...], 0.0)                   # bias + ReLU (f32)
    o_ref[...] = out.astype(o_ref.dtype)


def _pick_lane_tile(lp, cin_total, cout, batch, act_itemsize):
    """Lane tile (multiple of 128) sized from an explicit VMEM budget."""
    lp128 = _round_up(lp, 128)
    per_lane = (2 * cout * act_itemsize          # double-buffered output tile
                + 4 * cout                       # f32 accumulator value
                + 6 * cin_total * act_itemsize)  # chunk + tap live values
    tn = (_LANE_TILE_BUDGET // max(per_lane, 1)) // 128 * 128
    tn = max(128, min(tn, lp128, _MAX_LANE_TILE))
    # Keep >=2 grid steps so both v7x TensorCores get work even when batch==1.
    if batch * _cdiv(lp, tn) < 2 and lp >= 256:
        tn = _round_up(_cdiv(lp, 2), 128)
    return tn


def rebnconv_pallas(xs, w4, b_eff, dirate):
    """REBNCONV via Pallas, with in-kernel tap construction.

    xs    : list of (B, Cin_i, H, W) activations.  A 2-element list replaces
            torch.cat((a, b), dim=1) of the decoder stages (never materialized).
    w4    : (Cout, sum(Cin_i), 3, 3) conv weight with eval-mode BN folded in.
    b_eff : (Cout,) float32 bias with eval-mode BN folded in.
    """
    B, _, H, W = xs[0].shape
    cins = tuple(int(x.shape[1]) for x in xs)
    cout = int(w4.shape[0])
    d = int(dirate)
    act = xs[0].dtype

    Hp, Wp = H + 2 * d, W + 2 * d
    lp = Hp * Wp                       # padded-frame spatial extent
    halo = d * (Wp + 1)                # max |tap offset| in the flattened frame
    tn = _pick_lane_tile(lp, sum(cins), cout, B, act.itemsize)
    n_tiles = _cdiv(lp, tn)
    lout = n_tiles * tn
    lin = lout + 2 * halo

    # Flattened, zero-haloed padded inputs: [halo zeros | padded frame | zeros].
    xflat = []
    for x in xs:
        xp = jnp.pad(x, ((0, 0), (0, 0), (d, d), (d, d)))
        xf = xp.reshape(B, x.shape[1], lp)
        xf = jnp.pad(xf, ((0, 0), (0, 0), (halo, lin - lp - halo)))
        xflat.append(xf)

    # Per-input, per-tap weights: (9, Cout, Cin_i), tap order (ky, kx).
    ws, c0 = [], 0
    for ci in cins:
        wi = w4[:, c0:c0 + ci].astype(act)                     # (Cout, ci, 3, 3)
        ws.append(jnp.transpose(wi, (2, 3, 0, 1)).reshape(9, cout, ci))
        c0 += ci
    b2 = b_eff.astype(jnp.float32).reshape(cout, 1)

    # Tap lane offsets inside the (tn + 2*halo) chunk, same (ky, kx) order.
    offsets = tuple(halo + d * ((ky - 1) * Wp + (kx - 1))
                    for ky in range(3) for kx in range(3))

    in_specs = (
        [pl.BlockSpec((None, ci, lin), lambda b, j: (b, 0, 0)) for ci in cins]
        + [pl.BlockSpec((9, cout, ci), lambda b, j: (0, 0, 0)) for ci in cins]
        + [pl.BlockSpec((cout, 1), lambda b, j: (0, 0))]
    )
    out_spec = pl.BlockSpec((None, cout, tn), lambda b, j: (b, 0, j))

    flops = 2 * B * cout * 9 * sum(cins) * lp
    bytes_accessed = ((sum(B * ci * lin for ci in cins) + B * cout * lout)
                      * act.itemsize
                      + 9 * cout * sum(cins) * act.itemsize + cout * 4)
    cost = pl.CostEstimate(flops=int(flops), transcendentals=0,
                           bytes_accessed=int(bytes_accessed))

    # VMEM: resident inputs + double-buffered output tile + live values.
    vmem_est = (2 * sum(ci * lin for ci in cins) * act.itemsize
                + 2 * cout * tn * act.itemsize
                + 9 * cout * sum(cins) * act.itemsize
                + cout * tn * 4
                + 4 * max(cins) * (tn + 2 * halo) * act.itemsize)
    vmem_limit = int(min(56 << 20, max(32 << 20, 2 * vmem_est)))

    kernel = functools.partial(_rebnconv_kernel, cins, cout, tn, halo, offsets)

    out = pl.pallas_call(
        kernel,
        out_shape=jax.ShapeDtypeStruct((B, cout, lout), act),
        grid_spec=pltpu.PrefetchScalarGridSpec(
            num_scalar_prefetch=0,
            grid=(B, n_tiles),
            in_specs=in_specs,
            out_specs=out_spec,
        ),
        compiler_params=pltpu.CompilerParams(
            dimension_semantics=("parallel", "parallel"),
            vmem_limit_bytes=vmem_limit),
        cost_estimate=cost,
    )(*xflat, *ws, b2)

    # Drop the padded-frame border + lane padding (one cheap fused slice pass).
    out = out[:, :, :lp].reshape(B, cout, Hp, Wp)[:, :, d:d + H, d:d + W]
    return out


# --------------------------------------------------------------------------
# XLA conv path: exact same math, used for tiny deep stages and as reference.
# --------------------------------------------------------------------------
def rebnconv_xla(xs, w4, b_eff, dirate):
    x = xs[0] if len(xs) == 1 else jnp.concatenate(xs, axis=1)
    d = int(dirate)
    y = jax.lax.conv_general_dilated(
        x, w4.astype(x.dtype), window_strides=(1, 1),
        padding=((d, d), (d, d)), rhs_dilation=(d, d),
        dimension_numbers=("NCHW", "OIHW", "NCHW"),
        preferred_element_type=jnp.float32)
    y = y + b_eff.astype(jnp.float32)[None, :, None, None]
    return jnp.maximum(y, 0.0).astype(x.dtype)


def rebnconv_auto(xs, w4, b_eff, dirate):
    H, W = xs[0].shape[2], xs[0].shape[3]
    if H * W >= _MIN_PALLAS_HW:
        return rebnconv_pallas(xs, w4, b_eff, dirate)
    # Tiny deep stages: per-image lane width << 128 and fixed launch overhead
    # dominates -> plain XLA conv (per the perf review).
    return rebnconv_xla(xs, w4, b_eff, dirate)


# --------------------------------------------------------------------------
# Glue ops (plain JAX): max-pool 2x2 ceil_mode, bilinear upsample, BN folding.
# --------------------------------------------------------------------------
def maxpool2x2_ceil(x):
    B, C, H, W = x.shape
    Hp, Wp = _round_up(H, 2), _round_up(W, 2)
    if (Hp, Wp) != (H, W):  # ceil_mode: pad partial windows with -inf
        x = jnp.pad(x, ((0, 0), (0, 0), (0, Hp - H), (0, Wp - W)),
                    constant_values=-jnp.inf)
    x = x.reshape(B, C, Hp // 2, 2, Wp // 2, 2)
    return x.max(axis=(3, 5))


def upsample_like(src, tar):
    # F.upsample(mode='bilinear') (align_corners=False / half-pixel) matches
    # jax.image.resize('bilinear').
    B, C = src.shape[0], src.shape[1]
    return jax.image.resize(src, (B, C, tar.shape[2], tar.shape[3]),
                            method="bilinear")


def fold_conv_bn(w, b, gamma, beta, mean, var, eps=1e-5):
    """Fold eval-mode BN into a 3x3 conv.  Returns ((Cout,Cin,3,3) f32, (Cout,) f32)."""
    scale = gamma / jnp.sqrt(var + eps)
    w_eff = w * scale[:, None, None, None]
    b_eff = (b - mean) * scale + beta
    return w_eff.astype(jnp.float32), b_eff.astype(jnp.float32)


# --------------------------------------------------------------------------
# RSU7 forward pass (matches the PyTorch module's data flow).
# --------------------------------------------------------------------------
def rsu7_forward(x, params, conv_fn, act_dtype=jnp.bfloat16):
    x = x.astype(act_dtype)

    def reb(name, hs, dirate=1):
        w4, b = params[name]
        return conv_fn(hs, w4, b, dirate)

    hxin = reb("in", [x])
    hx1 = reb("1", [hxin])
    hx = maxpool2x2_ceil(hx1)
    hx2 = reb("2", [hx])
    hx = maxpool2x2_ceil(hx2)
    hx3 = reb("3", [hx])
    hx = maxpool2x2_ceil(hx3)
    hx4 = reb("4", [hx])
    hx = maxpool2x2_ceil(hx4)
    hx5 = reb("5", [hx])
    hx = maxpool2x2_ceil(hx5)
    hx6 = reb("6", [hx])
    hx7 = reb("7", [hx6], dirate=2)

    # Decoder: concat operands passed separately (torch.cat order preserved);
    # the Pallas path never materializes the concatenation in HBM.
    hx6d = reb("6d", [hx7, hx6])
    hx6dup = upsample_like(hx6d, hx5)
    hx5d = reb("5d", [hx6dup, hx5])
    hx5dup = upsample_like(hx5d, hx4)
    hx4d = reb("4d", [hx5dup, hx4])
    hx4dup = upsample_like(hx4d, hx3)
    hx3d = reb("3d", [hx4dup, hx3])
    hx3dup = upsample_like(hx3d, hx2)
    hx2d = reb("2d", [hx3dup, hx2])
    hx2dup = upsample_like(hx2d, hx1)
    hx1d = reb("1d", [hx2dup, hx1])

    return hx1d + hxin


# --------------------------------------------------------------------------
# Self-contained test.
# --------------------------------------------------------------------------
if __name__ == "__main__":
    B, in_ch, mid_ch, out_ch = 2, 3, 12, 3
    H = W = 64   # pools down 64 -> 32 -> 16 -> 8 -> 4 -> 2

    key = jax.random.PRNGKey(0)

    def make_rebnconv_params(k, cin, cout):
        ks = jax.random.split(k, 6)
        std = jnp.sqrt(2.0 / (9.0 * cin))
        w = std * jax.random.normal(ks[0], (cout, cin, 3, 3), jnp.float32)
        b = 0.1 * jax.random.normal(ks[1], (cout,), jnp.float32)
        gamma = 1.0 + 0.1 * jax.random.normal(ks[2], (cout,), jnp.float32)
        beta = 0.1 * jax.random.normal(ks[3], (cout,), jnp.float32)
        mean = 0.1 * jax.random.normal(ks[4], (cout,), jnp.float32)
        var = 1.0 + 0.1 * jax.random.uniform(ks[5], (cout,), jnp.float32)
        return fold_conv_bn(w, b, gamma, beta, mean, var)

    layer_defs = [
        ("in", in_ch, out_ch), ("1", out_ch, mid_ch),
        ("2", mid_ch, mid_ch), ("3", mid_ch, mid_ch), ("4", mid_ch, mid_ch),
        ("5", mid_ch, mid_ch), ("6", mid_ch, mid_ch), ("7", mid_ch, mid_ch),
        ("6d", 2 * mid_ch, mid_ch), ("5d", 2 * mid_ch, mid_ch),
        ("4d", 2 * mid_ch, mid_ch), ("3d", 2 * mid_ch, mid_ch),
        ("2d", 2 * mid_ch, mid_ch), ("1d", 2 * mid_ch, out_ch),
    ]
    keys = jax.random.split(key, len(layer_defs) + 2)
    params = {name: make_rebnconv_params(k, cin, cout)
              for (name, cin, cout), k in zip(layer_defs, keys[:-2])}

    x = jax.random.normal(keys[-1], (B, in_ch, H, W), jnp.float32)

    # --- single-stage unit checks (tight tolerance, exercises dirate=2 and
    # --- the two-input decoder path of the Pallas kernel) -------------------
    xu = jax.random.normal(keys[-2], (B, mid_ch, 32, 32), jnp.float32)
    xu = xu.astype(_ACT_DTYPE)
    w_u, b_u = params["2"]
    y_p = jax.block_until_ready(jax.jit(
        lambda a: rebnconv_pallas([a], w_u, b_u, 1))(xu))
    y_r = jax.jit(lambda a: rebnconv_xla([a], w_u, b_u, 1))(xu)
    assert jnp.allclose(y_p.astype(jnp.float32), y_r.astype(jnp.float32),
                        atol=2e-2, rtol=2e-2)
    y_p = jax.block_until_ready(jax.jit(
        lambda a: rebnconv_pallas([a], w_u, b_u, 2))(xu))
    y_r = jax.jit(lambda a: rebnconv_xla([a], w_u, b_u, 2))(xu)
    assert jnp.allclose(y_p.astype(jnp.float32), y_r.astype(jnp.float32),
                        atol=2e-2, rtol=2e-2)
    w_d, b_d = params["2d"]
    y_p = jax.block_until_ready(jax.jit(
        lambda a, b: rebnconv_pallas([a, b], w_d, b_d, 1))(xu, xu))
    y_r = jax.jit(lambda a, b: rebnconv_xla([a, b], w_d, b_d, 1))(xu, xu)
    assert jnp.allclose(y_p.astype(jnp.float32), y_r.astype(jnp.float32),
                        atol=2e-2, rtol=2e-2)

    # --- full RSU7 forward: Pallas vs matched-precision XLA reference -------
    fwd_pallas = jax.jit(functools.partial(
        rsu7_forward, conv_fn=rebnconv_auto, act_dtype=_ACT_DTYPE))
    out = jax.block_until_ready(fwd_pallas(x, params))

    fwd_ref = jax.jit(functools.partial(
        rsu7_forward, conv_fn=rebnconv_xla, act_dtype=_ACT_DTYPE))
    ref = jax.block_until_ready(fwd_ref(x, params))

    assert out.shape == (B, out_ch, H, W)
    o32 = out.astype(jnp.float32)
    r32 = ref.astype(jnp.float32)
    max_err = float(jnp.max(jnp.abs(o32 - r32)))
    assert jnp.allclose(o32, r32, atol=5e-2, rtol=5e-2), f"max_err={max_err}"

    print("KERNEL_OK")
</pallas_src>

<mosaic_0001>
module attributes {stable_mosaic.version = 11 : i64} {
  func.func @_rebnconv_kernel(%arg0: i32, %arg1: i32, %arg2: memref<1x12x1350xbf16, #tpu.memory_space<vmem>>, %arg3: memref<9x12x12xbf16, #tpu.memory_space<vmem>>, %arg4: memref<12x1xf32, #tpu.memory_space<vmem>>, %arg5: memref<1x12x1280xbf16, #tpu.memory_space<vmem>>) attributes {dimension_semantics = [#tpu.dimension_semantics<parallel>, #tpu.dimension_semantics<parallel>], iteration_bounds = array<i64: 2, 1>, scalar_prefetch = 0 : i64, scratch_operands = 0 : i64, tpu.core_type = #tpu.core_type<tc>, window_params = [{transform_indices = @transform_0, window_bounds = array<i64: 1, 12, 1350>}, {pipeline_mode = #tpu.pipeline_mode<synchronous>, transform_indices = @transform_1, window_bounds = array<i64: 9, 12, 12>}, {pipeline_mode = #tpu.pipeline_mode<synchronous>, transform_indices = @transform_2, window_bounds = array<i64: 12, 1>}, {transform_indices = @transform_3, window_bounds = array<i64: 1, 12, 1280>}]} {
    %c1280_i32 = arith.constant 1280 : i32
    %0 = arith.muli %arg1, %c1280_i32 : i32
    %1 = tpu.assume_multiple %0, 128 : i32
    %cst = arith.constant 0.000000e+00 : f32
    %2 = vector.broadcast %cst : f32 to vector<12x1280xf32>
    %c0 = arith.constant 0 : index
    %c0_0 = arith.constant 0 : index
    %3 = arith.index_cast %1 : i32 to index
    %4 = vector.load %arg2[%c0, %c0_0, %3] : memref<1x12x1350xbf16, #tpu.memory_space<vmem>>, vector<1x12x1350xbf16>
    %5 = vector.shape_cast %4 : vector<1x12x1350xbf16> to vector<12x1350xbf16>
    %6 = vector.extract_strided_slice %5 {offsets = [0, 0], sizes = [12, 1280], strides = [1, 1]} : vector<12x1350xbf16> to vector<12x1280xbf16>
    %c0_1 = arith.constant 0 : index
    %c0_2 = arith.constant 0 : index
    %c0_3 = arith.constant 0 : index
    %7 = vector.load %arg3[%c0_1, %c0_2, %c0_3] : memref<9x12x12xbf16, #tpu.memory_space<vmem>>, vector<1x12x12xbf16>
    %8 = vector.shape_cast %7 : vector<1x12x12xbf16> to vector<12x12xbf16>
    %cst_4 = arith.constant dense<0.000000e+00> : vector<12x1280xf32>
    %9 = tpu.matmul %8, %6, %cst_4 {dimension_numbers = #tpu.dot_dimension_numbers<[1], [0], [0], [1], [0, 0, 1, 1], [], []>} : vector<12x12xbf16>, vector<12x1280xbf16>, vector<12x1280xf32> -> vector<12x1280xf32>
    %10 = arith.addf %2, %9 : vector<12x1280xf32>
    %11 = vector.extract_strided_slice %5 {offsets = [0, 1], sizes = [12, 1280], strides = [1, 1]} : vector<12x1350xbf16> to vector<12x1280xbf16>
    %c1 = arith.constant 1 : index
    %c0_5 = arith.constant 0 : index
    %c0_6 = arith.constant 0 : index
    %12 = vector.load %arg3[%c1, %c0_5, %c0_6] : memref<9x12x12xbf16, #tpu.memory_space<vmem>>, vector<1x12x12xbf16>
    %13 = vector.shape_cast %12 : vector<1x12x12xbf16> to vector<12x12xbf16>
    %cst_7 = arith.constant dense<0.000000e+00> : vector<12x1280xf32>
    %14 = tpu.matmul %13, %11, %cst_7 {dimension_numbers = #tpu.dot_dimension_numbers<[1], [0], [0], [1], [0, 0, 1, 1], [], []>} : vector<12x12xbf16>, vector<12x1280xbf16>, vector<12x1280xf32> -> vector<12x1280xf32>
    %15 = arith.addf %10, %14 : vector<12x1280xf32>
    %16 = vector.extract_strided_slice %5 {offsets = [0, 2], sizes = [12, 1280], strides = [1, 1]} : vector<12x1350xbf16> to vector<12x1280xbf16>
    %c2 = arith.constant 2 : index
    %c0_8 = arith.constant 0 : index
    %c0_9 = arith.constant 0 : index
    %17 = vector.load %arg3[%c2, %c0_8, %c0_9] : memref<9x12x12xbf16, #tpu.memory_space<vmem>>, vector<1x12x12xbf16>
    %18 = vector.shape_cast %17 : vector<1x12x12xbf16> to vector<12x12xbf16>
    %cst_10 = arith.constant dense<0.000000e+00> : vector<12x1280xf32>
    %19 = tpu.matmul %18, %16, %cst_10 {dimension_numbers = #tpu.dot_dimension_numbers<[1], [0], [0], [1], [0, 0, 1, 1], [], []>} : vector<12x12xbf16>, vector<12x1280xbf16>, vector<12x1280xf32> -> vector<12x1280xf32>
    %20 = arith.addf %15, %19 : vector<12x1280xf32>
    %21 = vector.extract_strided_slice %5 {offsets = [0, 34], sizes = [12, 1280], strides = [1, 1]} : vector<12x1350xbf16> to vector<12x1280xbf16>
    %c3 = arith.constant 3 : index
    %c0_11 = arith.constant 0 : index
    %c0_12 = arith.constant 0 : index
    %22 = vector.load %arg3[%c3, %c0_11, %c0_12] : memref<9x12x12xbf16, #tpu.memory_space<vmem>>, vector<1x12x12xbf16>
    %23 = vector.shape_cast %22 : vector<1x12x12xbf16> to vector<12x12xbf16>
    %cst_13 = arith.constant dense<0.000000e+00> : vector<12x1280xf32>
    %24 = tpu.matmul %23, %21, %cst_13 {dimension_numbers = #tpu.dot_dimension_numbers<[1], [0], [0], [1], [0, 0, 1, 1], [], []>} : vector<12x12xbf16>, vector<12x1280xbf16>, vector<12x1280xf32> -> vector<12x1280xf32>
    %25 = arith.addf %20, %24 : vector<12x1280xf32>
    %26 = vector.extract_strided_slice %5 {offsets = [0, 35], sizes = [12, 1280], strides = [1, 1]} : vector<12x1350xbf16> to vector<12x1280xbf16>
    %c4 = arith.constant 4 : index
    %c0_14 = arith.constant 0 : index
    %c0_15 = arith.constant 0 : index
    %27 = vector.load %arg3[%c4, %c0_14, %c0_15] : memref<9x12x12xbf16, #tpu.memory_space<vmem>>, vector<1x12x12xbf16>
    %28 = vector.shape_cast %27 : vector<1x12x12xbf16> to vector<12x12xbf16>
    %cst_16 = arith.constant dense<0.000000e+00> : vector<12x1280xf32>
    %29 = tpu.matmul %28, %26, %cst_16 {dimension_numbers = #tpu.dot_dimension_numbers<[1], [0], [0], [1], [0, 0, 1, 1], [], []>} : vector<12x12xbf16>, vector<12x1280xbf16>, vector<12x1280xf32> -> vector<12x1280xf32>
    %30 = arith.addf %25, %29 : vector<12x1280xf32>
    %31 = vector.extract_strided_slice %5 {offsets = [0, 36], sizes = [12, 1280], strides = [1, 1]} : vector<12x1350xbf16> to vector<12x1280xbf16>
    %c5 = arith.constant 5 : index
    %c0_17 = arith.constant 0 : index
    %c0_18 = arith.constant 0 : index
    %32 = vector.load %arg3[%c5, %c0_17, %c0_18] : memref<9x12x12xbf16, #tpu.memory_space<vmem>>, vector<1x12x12xbf16>
    %33 = vector.shape_cast %32 : vector<1x12x12xbf16> to vector<12x12xbf16>
    %cst_19 = arith.constant dense<0.000000e+00> : vector<12x1280xf32>
    %34 = tpu.matmul %33, %31, %cst_19 {dimension_numbers = #tpu.dot_dimension_numbers<[1], [0], [0], [1], [0, 0, 1, 1], [], []>} : vector<12x12xbf16>, vector<12x1280xbf16>, vector<12x1280xf32> -> vector<12x1280xf32>
    %35 = arith.addf %30, %34 : vector<12x1280xf32>
    %36 = vector.extract_strided_slice %5 {offsets = [0, 68], sizes = [12, 1280], strides = [1, 1]} : vector<12x1350xbf16> to vector<12x1280xbf16>
    %c6 = arith.constant 6 : index
    %c0_20 = arith.constant 0 : index
    %c0_21 = arith.constant 0 : index
    %37 = vector.load %arg3[%c6, %c0_20, %c0_21] : memref<9x12x12xbf16, #tpu.memory_space<vmem>>, vector<1x12x12xbf16>
    %38 = vector.shape_cast %37 : vector<1x12x12xbf16> to vector<12x12xbf16>
    %cst_22 = arith.constant dense<0.000000e+00> : vector<12x1280xf32>
    %39 = tpu.matmul %38, %36, %cst_22 {dimension_numbers = #tpu.dot_dimension_numbers<[1], [0], [0], [1], [0, 0, 1, 1], [], []>} : vector<12x12xbf16>, vector<12x1280xbf16>, vector<12x1280xf32> -> vector<12x1280xf32>
    %40 = arith.addf %35, %39 : vector<12x1280xf32>
    %41 = vector.extract_strided_slice %5 {offsets = [0, 69], sizes = [12, 1280], strides = [1, 1]} : vector<12x1350xbf16> to vector<12x1280xbf16>
    %c7 = arith.constant 7 : index
    %c0_23 = arith.constant 0 : index
    %c0_24 = arith.constant 0 : index
    %42 = vector.load %arg3[%c7, %c0_23, %c0_24] : memref<9x12x12xbf16, #tpu.memory_space<vmem>>, vector<1x12x12xbf16>
    %43 = vector.shape_cast %42 : vector<1x12x12xbf16> to vector<12x12xbf16>
    %cst_25 = arith.constant dense<0.000000e+00> : vector<12x1280xf32>
    %44 = tpu.matmul %43, %41, %cst_25 {dimension_numbers = #tpu.dot_dimension_numbers<[1], [0], [0], [1], [0, 0, 1, 1], [], []>} : vector<12x12xbf16>, vector<12x1280xbf16>, vector<12x1280xf32> -> vector<12x1280xf32>
    %45 = arith.addf %40, %44 : vector<12x1280xf32>
    %46 = vector.extract_strided_slice %5 {offsets = [0, 70], sizes = [12, 1280], strides = [1, 1]} : vector<12x1350xbf16> to vector<12x1280xbf16>
    %c8 = arith.constant 8 : index
    %c0_26 = arith.constant 0 : index
    %c0_27 = arith.constant 0 : index
    %47 = vector.load %arg3[%c8, %c0_26, %c0_27] : memref<9x12x12xbf16, #tpu.memory_space<vmem>>, vector<1x12x12xbf16>
    %48 = vector.shape_cast %47 : vector<1x12x12xbf16> to vector<12x12xbf16>
    %cst_28 = arith.constant dense<0.000000e+00> : vector<12x1280xf32>
    %49 = tpu.matmul %48, %46, %cst_28 {dimension_numbers = #tpu.dot_dimension_numbers<[1], [0], [0], [1], [0, 0, 1, 1], [], []>} : vector<12x12xbf16>, vector<12x1280xbf16>, vector<12x1280xf32> -> vector<12x1280xf32>
    %50 = arith.addf %45, %49 : vector<12x1280xf32>
    %c0_29 = arith.constant 0 : index
    %c0_30 = arith.constant 0 : index
    %51 = vector.load %arg4[%c0_29, %c0_30] : memref<12x1xf32, #tpu.memory_space<vmem>>, vector<12x1xf32>
    %52 = vector.broadcast %51 : vector<12x1xf32> to vector<12x1280xf32>
    %53 = arith.addf %50, %52 : vector<12x1280xf32>
    %cst_31 = arith.constant 0.000000e+00 : f32
    %54 = vector.broadcast %cst_31 : f32 to vector<12x1280xf32>
    %55 = arith.maximumf %53, %54 : vector<12x1280xf32>
    %56 = arith.truncf %55 : vector<12x1280xf32> to vector<12x1280xbf16>
    %c0_32 = arith.constant 0 : index
    %c0_33 = arith.constant 0 : index
    %c0_34 = arith.constant 0 : index
    %57 = vector.load %arg5[%c0_32, %c0_33, %c0_34] : memref<1x12x1280xbf16, #tpu.memory_space<vmem>>, vector<1x12x1280xbf16>
    %58 = vector.shape_cast %57 : vector<1x12x1280xbf16> to vector<12x1280xbf16>
    %59 = vector.shape_cast %56 : vector<12x1280xbf16> to vector<1x12x1280xbf16>
    tpu.vector_store %arg5[%c0_32, %c0_33, %c0_34], %59 {strides = array<i32>} : memref<1x12x1280xbf16, #tpu.memory_space<vmem>>, vector<1x12x1280xbf16>,
    return
  }
  func.func @transform_0(%arg0: i32, %arg1: i32) -> (i32, i32, i32) {
    %c0_i32 = arith.constant 0 : i32
    %c0_i32_0 = arith.constant 0 : i32
    %c0_i32_1 = arith.constant 0 : i32
    return %arg0, %c0_i32, %c0_i32_0 : i32, i32, i32
  }
  func.func @transform_1(%arg0: i32, %arg1: i32) -> (i32, i32, i32) {
    %c0_i32 = arith.constant 0 : i32
    %c0_i32_0 = arith.constant 0 : i32
    %c0_i32_1 = arith.constant 0 : i32
    %c0_i32_2 = arith.constant 0 : i32
    return %c0_i32, %c0_i32_0, %c0_i32_1 : i32, i32, i32
  }
  func.func @transform_2(%arg0: i32, %arg1: i32) -> (i32, i32) {
    %c0_i32 = arith.constant 0 : i32
    %c0_i32_0 = arith.constant 0 : i32
    %c0_i32_1 = arith.constant 0 : i32
    return %c0_i32, %c0_i32_0 : i32, i32
  }
  func.func @transform_3(%arg0: i32, %arg1: i32) -> (i32, i32, i32) {
    %c0_i32 = arith.constant 0 : i32
    %c0_i32_0 = arith.constant 0 : i32
    return %arg0, %c0_i32, %arg1 : i32, i32, i32
  }
}

</mosaic_0001>

<bundles_post_ra>
// kernel: _lambda_.1
= control target key start
LH: loop header
LB: loop body
LE: loop exit
PB: predicated region body
PF: predicated region fallthrough
CT: control target
= control target key end

     0   :  { %s3601_s12 = smov 0   ;;  %s3603_s13 = smov 0   ;;  %s4316_s0 = inlined_call_operand.vmem [shape: bf16[2,12,1350], index: 0, kind: input, shape index: {}]   ;;  %s4317_s1 = inlined_call_operand.vmem [shape: bf16[9,12,12], index: 1, kind: input, shape index: {}]   ;;  %s4318_s2 = inlined_call_operand.vmem [shape: f32[12,1], index: 2, kind: input, shape index: {}]   ;;  %s4319_s3 = inlined_call_operand.vmem [shape: bf16[2,12,1280], index: 3, kind: output, shape index: {}]  }
   0x1   :  { %s3605_s14 = smov 0  }
   0x2 LB: > { %s25_s15 = sadd.s32 1, %s3566_s13  ;;  %p3175_p0 = scmp.ge.s32.totalorder %s3570_s14, 1  ;;  %s3570_s14 = sphi %s3605_s14, %s13_s14   ;;  %s3566_s13 = sphi %s3603_s13, %s4321_s13   ;;  %s3562_s12 = sphi %s3601_s12, %s4320_s12  }
   0x3   : > { %p27_p1 = scmp.ge.s32.totalorder %s25_s15, 2  ;;  %p151_p2 = scmp.lt.s32.totalorder %s3570_s14, 3 }
   0x5   : > { %s4323_s15 = smov (%p27_p1, %s25_s15), 0  ;;  %p152_p3 = pnand %p3175_p0, %p151_p2 }
   0x6   : > { %p179_p4 = scmp.lt.s32.totalorder (!%p152_p3), %s3562_s12, 1  ;;  %v3572_v0 = vmov (!%p152_p3), 0   ;;  %s3573_s20 = smov (!%p152_p3), 127   ;;  %vm304_vm0 = vcmask (!%p152_p3), 1045504   ;;  %v3659_v7 = vld [vmem:[%s4317_s1] sm:$0x3f] (!%p152_p3)  }
   0x7   : > { %155 = sbr.rel (%p152_p3) target bundleno = 541 (0x21d), region = 32  ;;  %706 = vmatprep.mubr.bf16.mxu0 (!%p152_p3), %v3572_v0  ;;  %367 = vmatprep.mubr.bf16.mxu1 (!%p152_p3), %v3572_v0  ;;  %s3574_s21 = smov (!%p152_p3), 126   ;;  %vm300_vm1 = vcmask (!%p152_p3), 97280   ;;  %vm289_vm2 = vcmask (!%p152_p3), 1039360   ;;  %vm833_vm3 = vcmask (!%p152_p3), 1031168   ;;  %vm1142_vm4 = vcmask (!%p152_p3), 769024  }
   0x8   : > { %3521 = vset.pattern.permute.xlu0 (!%p152_p3), %v3572_v0  ;;  %3522 = vset.pattern.permute.xlu1 (!%p152_p3), %v3572_v0  ;;  %s3575_s24 = smov (!%p152_p3), 94   ;;  %s3576_s25 = smov (!%p152_p3), 93   ;;  %v3805_v23 = vld [vmem:[%s4317_s1 + $0x8] sm:$0x3f] (!%p152_p3)   ;;  %v3821_v29 = vld [vmem:[%s4317_s1 + $0x10] sm:$0x3f] (!%p152_p3)  }
   0x9   : > { %s3577_s26 = smov (!%p152_p3), 92   ;;  %s3578_s27 = smov (!%p152_p3), 60   ;;  %v3913_v63 = vld [vmem:[%s4317_s1 + $0x18] sm:$0x3f] (!%p152_p3)   ;;  %vm1451_vm5 = vcmask (!%p152_p3), 760832   ;;  %vm1760_vm6 = vcmask (!%p152_p3), 752640  }
   0xa   : > { %s3579_s5 = smov (!%p152_p3), 59   ;;  %s3580_s6 = smov (!%p152_p3), 58   ;;  %vm2069_vm7 = vcmask (!%p152_p3), 490496   ;;  %vm2378_vm8 = vcmask (!%p152_p3), 482304   ;;  %vm2687_vm9 = vcmask (!%p152_p3), 474112  }
   0xe   : > { %s4325_s12 = smov (!%p179_p4, %s3562_s12), 1 }
   0xf   : > { %s3486_s16 = smul.u32 88, %s4325_s12 }
  0x11   : > { %s3629_s19 = scalar_lea.vmem %s4316_s0, %s3486_s16 }
  0x12   : > { %v3632_v1 = vld [vmem:[%s3629_s19 + $0x8] ss:$44 sps:$4 sm:$0x3f]   ;;  %v3635_v2 = vld [vmem:[%s3629_s19] ss:$44 sps:$4 sm:$0x3f]  }
  0x13   : > { %271 = vrot.lane.b32.xlu1 %v3632_v1, %s3573_s20  ;;  %267 = vrot.lane.b32.xlu0 %v3635_v2, %s3573_s20  ;;  %v3642_v3 = vld [vmem:[%s3629_s19 + $0x4] ss:$44 sps:$4 sm:$0x3f]   ;;  %v3648_v5 = vld [vmem:[%s3629_s19 + $0x14] ss:$44 sps:$4 sm:$0x3f]  }
  0x14   : > { %v3645_v4 = vld [vmem:[%s3629_s19 + $0x10] ss:$44 sps:$4 sm:$0x3f]   ;;  %3207 = vmatprep.subr.msk.bf16.mxu0 %vm304_vm0, %v3648_v5  ;;  %v3664_v8 = vld [vmem:[%s3629_s19 + $0x20] ss:$44 sps:$4 sm:$0x3f]  }
  0x15   : > { %v571_v6 = vsel %vm304_vm0, %v3645_v4, 0  ;;  %v3667_v9 = vld [vmem:[%s3629_s19 + $0xc] ss:$44 sps:$4 sm:$0x3f]   ;;  %v583_v11 = vsel %vm304_vm0, %v3664_v8, 0 }
  0x16   : > { %675 = vmatpush1.bf16.msra.mxu0 %v571_v6  ;;  %v3670_v10 = vld [vmem:[%s3629_s19 + $0x24] ss:$44 sps:$4 sm:$0x3f]   ;;  %v3704_v13 = vld [vmem:[%s3629_s19 + $0x28] ss:$44 sps:$4 sm:$0x3f]  }
  0x17   : > { %811 = vrot.lane.b32.xlu1 %v3635_v2, %s3574_s21  ;;  %269 = vrot.lane.b32.xlu0 %v3642_v3, %s3573_s20  ;;  %v3694_v12 = vld [vmem:[%s3629_s19 + $0x18] ss:$44 sps:$4 sm:$0x3f]   ;;  %v3713_v14 = vld [vmem:[%s3629_s19 + $0x1c] ss:$44 sps:$4 sm:$0x3f]  }
  0x18   : > { %3211 = vmatprep.subr.msk.bf16.mxu0 %vm304_vm0, %v3670_v10 }
  0x19   : > { %3208 = vmatmul.mubr.msk.bf16.vlgmr.msra.gmra.mrb[0].mxu0 %vm300_vm1, %v3659_v7 }
  0x1a   : > { %761 = vmatpush1.bf16.msra.mxu0 %v583_v11  ;;  %792 = vmatprep.mubr.bf16.mxu0 %v3572_v0 }
  0x1b   : > { %815 = vrot.lane.b32.xlu1 %v3632_v1, %s3574_s21  ;;  %813 = vrot.lane.b32.xlu0 %v3642_v3, %s3574_s21 }
  0x1f   : > { %275 = vrot.lane.b32.xlu1 %v3645_v4, %s3573_s20  ;;  %273 = vrot.lane.b32.xlu0 %v3667_v9, %s3573_s20 }
  0x21   : > { %3212 = vmatmul.mubr.msk.bf16.vlgmr.msra.gmra.mrb[4].mxu0 %vm300_vm1, %v3659_v7 }
  0x22   : > { %909 = vmatprep.mubr.bf16.mxu0 %v3572_v0 }
  0x23   : > { %821 = vrot.lane.b32.xlu1 %v3648_v5, %s3574_s21  ;;  %819 = vrot.lane.b32.xlu0 %v3645_v4, %s3574_s21 }
  0x27   : > { %277 = vrot.lane.b32.xlu1 %v3648_v5, %s3573_s20  ;;  %823 = vrot.lane.b32.xlu0 %v3694_v12, %s3574_s21 }
  0x2b   : > { %827 = vrot.lane.b32.xlu1 %v3664_v8, %s3574_s21  ;;  %279 = vrot.lane.b32.xlu0 %v3694_v12, %s3573_s20 }
  0x2f   : > { %831 = vrot.lane.b32.xlu1 %v3704_v13, %s3574_s21  ;;  %829 = vrot.lane.b32.xlu0 %v3670_v10, %s3574_s21 }
  0x33   : > { %283 = vrot.lane.b32.xlu1 %v3664_v8, %s3573_s20  ;;  %281 = vrot.lane.b32.xlu0 %v3713_v14, %s3573_s20 }
  0x37   : > { %1122 = vrot.lane.b32.xlu1 %v3642_v3, %s3575_s24  ;;  %1120 = vrot.lane.b32.xlu0 %v3635_v2, %s3575_s24 }
  0x3b   : > { %285 = vrot.lane.b32.xlu1 %v3670_v10, %s3573_s20  ;;  %1124 = vrot.lane.b32.xlu0 %v3632_v1, %s3575_s24 }
  0x3f   : > { %1128 = vrot.lane.b32.xlu1 %v3645_v4, %s3575_s24  ;;  %287 = vrot.lane.b32.xlu0 %v3704_v13, %s3573_s20 }
  0x43   : > { %1132 = vrot.lane.b32.xlu1 %v3694_v12, %s3575_s24  ;;  %1130 = vrot.lane.b32.xlu0 %v3648_v5, %s3575_s24 }
  0x47   : > { %1138 = vrot.lane.b32.xlu1 %v3670_v10, %s3575_s24  ;;  %1136 = vrot.lane.b32.xlu0 %v3664_v8, %s3575_s24 }
  0x4b   : > { %1429 = vrot.lane.b32.xlu1 %v3635_v2, %s3576_s25  ;;  %1140 = vrot.lane.b32.xlu0 %v3704_v13, %s3575_s24 }
  0x4f   : > { %1433 = vrot.lane.b32.xlu1 %v3632_v1, %s3576_s25  ;;  %1431 = vrot.lane.b32.xlu0 %v3642_v3, %s3576_s25 }
  0x53   : > { %1439 = vrot.lane.b32.xlu1 %v3648_v5, %s3576_s25  ;;  %1437 = vrot.lane.b32.xlu0 %v3645_v4, %s3576_s25 }
  0x57   : > { %817 = vrot.lane.b32.xlu1 %v3667_v9, %s3574_s21  ;;  %1441 = vrot.lane.b32.xlu0 %v3694_v12, %s3576_s25 }
  0x5b   : > { %1447 = vrot.lane.b32.xlu1 %v3670_v10, %s3576_s25  ;;  %1445 = vrot.lane.b32.xlu0 %v3664_v8, %s3576_s25 }
  0x5f   : > { %825 = vrot.lane.b32.xlu1 %v3713_v14, %s3574_s21  ;;  %1449 = vrot.lane.b32.xlu0 %v3704_v13, %s3576_s25 }
  0x63   : > { %1740 = vrot.lane.b32.xlu1 %v3642_v3, %s3577_s26  ;;  %1738 = vrot.lane.b32.xlu0 %v3635_v2, %s3577_s26 }
  0x67   : > { %1126 = vrot.lane.b32.xlu1 %v3667_v9, %s3575_s24  ;;  %1742 = vrot.lane.b32.xlu0 %v3632_v1, %s3577_s26 }
  0x6b   : > { %1748 = vrot.lane.b32.xlu1 %v3648_v5, %s3577_s26  ;;  %1746 = vrot.lane.b32.xlu0 %v3645_v4, %s3577_s26 }
  0x6f   : > { %1134 = vrot.lane.b32.xlu1 %v3713_v14, %s3575_s24  ;;  %1750 = vrot.lane.b32.xlu0 %v3694_v12, %s3577_s26 }
  0x73   : > { %1756 = vrot.lane.b32.xlu1 %v3670_v10, %s3577_s26  ;;  %1754 = vrot.lane.b32.xlu0 %v3664_v8, %s3577_s26 }
  0x77   : > { %1435 = vrot.lane.b32.xlu1 %v3667_v9, %s3576_s25  ;;  %1758 = vrot.lane.b32.xlu0 %v3704_v13, %s3577_s26 }
  0x7b   : > { %2049 = vrot.lane.b32.xlu1 %v3642_v3, %s3578_s27  ;;  %2047 = vrot.lane.b32.xlu0 %v3635_v2, %s3578_s27 }
  0x7f   : > { %1443 = vrot.lane.b32.xlu1 %v3713_v14, %s3576_s25  ;;  %2051 = vrot.lane.b32.xlu0 %v3632_v1, %s3578_s27 }
  0x83   : > { %2057 = vrot.lane.b32.xlu1 %v3648_v5, %s3578_s27  ;;  %2055 = vrot.lane.b32.xlu0 %v3645_v4, %s3578_s27 }
  0x85   : > { %v272_v15 = vpop.permute.xlu1 %271  ;;  %v268_v16 = vpop.permute.xlu0 %267 }
  0x87   : > { %1744 = vrot.lane.b32.xlu1 %v3667_v9, %s3577_s26  ;;  %2059 = vrot.lane.b32.xlu0 %v3694_v12, %s3578_s27 }
  0x89   : > { %v812_v17 = vpop.permute.xlu1 %811  ;;  %v270_v18 = vpop.permute.xlu0 %269 }
  0x8a   : > { %v291_v19 = vsel %vm289_vm2, %v270_v18, %v272_v15  ;;  %v290_v20 = vsel %vm289_vm2, %v268_v16, %v270_v18 }
  0x8b   : > { %2065 = vrot.lane.b32.xlu1 %v3670_v10, %s3578_s27  ;;  %3192 = vmatprep.subr.msk.bf16.mxu1 %vm304_vm0, %v291_v19  ;;  %v306_v21 = vsel %vm304_vm0, %v290_v20, 0 }
  0x8c   : > { %2063 = vrot.lane.b32.xlu0 %v3664_v8, %s3578_s27  ;;  %336 = vmatpush1.bf16.msra.mxu1 %v306_v21  ;;  %v559_v21 = vsel %vm304_vm0, %v3635_v2, 0 }
  0x8d   : > { %v3800_v22 = vpop.permute.xlu1 %815  ;;  %v814_v24 = vpop.permute.xlu0 %813 }
  0x8e   : > { %v834_v25 = vsel %vm833_vm3, %v812_v17, %v814_v24  ;;  %v835_v26 = vsel %vm833_vm3, %v814_v24, %v3800_v22 }
  0x8f   : > { %1752 = vrot.lane.b32.xlu1 %v3713_v14, %s3577_s26  ;;  %v848_v27 = vsel %vm304_vm0, %v834_v25, 0  ;;  %3216 = vmatprep.subr.msk.bf16.mxu0 %vm304_vm0, %v835_v26 }
  0x90   : > { %2067 = vrot.lane.b32.xlu0 %v3704_v13, %s3578_s27  ;;  %878 = vmatpush1.bf16.msra.mxu0 %v848_v27 }
  0x91   : > { %v276_v28 = vpop.permute.xlu1 %275  ;;  %3193 = vmatmul.mubr.msk.bf16.vlgmr.msra.gmra.mrb[0].mxu1 %vm300_vm1, %v3805_v23  ;;  %v274_v30 = vpop.permute.xlu0 %273 }
  0x92   : > { %410 = vmatprep.mubr.bf16.mxu1 %v3572_v0  ;;  %v292_v31 = vsel %vm289_vm2, %v272_v15, %v274_v30  ;;  %v293_v32 = vsel %vm289_vm2, %v274_v30, %v276_v28 }
  0x93   : > { %2358 = vrot.lane.b32.xlu1 %v3642_v3, %s3579_s5  ;;  %v312_v33 = vsel %vm304_vm0, %v292_v31, 0  ;;  %3194 = vmatprep.subr.msk.bf16.mxu1 %vm304_vm0, %v293_v32  ;;  %v577_v32 = vsel %vm304_vm0, %v3694_v12, 0 }
  0x94   : > { %2356 = vrot.lane.b32.xlu0 %v3635_v2, %s3579_s5  ;;  %379 = vmatpush1.bf16.msra.mxu1 %v312_v33 }
  0x95   : > { %v822_v34 = vpop.permute.xlu1 %821  ;;  %3217 = vmatmul.mubr.msk.bf16.vlgmr.msra.gmra.mrb[8].mxu0 %vm300_vm1, %v3821_v29  ;;  %v3834_v35 = vpop.permute.xlu0 %819 }
  0x96   : > { %995 = vmatprep.mubr.bf16.mxu0 %v3572_v0  ;;  %v838_v36 = vsel %vm833_vm3, %v3834_v35, %v822_v34 }
  0x97   : > { %2053 = vrot.lane.b32.xlu1 %v3667_v9, %s3578_s27  ;;  %v860_v40 = vsel %vm304_vm0, %v838_v36, 0 }
  0x98   : > { %2360 = vrot.lane.b32.xlu0 %v3632_v1, %s3579_s5 }
  0x99   : > { %v278_v37 = vpop.permute.xlu1 %277  ;;  %3195 = vmatmul.mubr.msk.bf16.vlgmr.msra.gmra.mrb[4].mxu1 %vm300_vm1, %v3805_v23  ;;  %v3845_v38 = vpop.permute.xlu0 %823 }
  0x9a   : > { %453 = vmatprep.mubr.bf16.mxu1 %v3572_v0  ;;  %v839_v39 = vsel %vm833_vm3, %v822_v34, %v3845_v38  ;;  %v294_v41 = vsel %vm289_vm2, %v276_v28, %v278_v37 }
  0x9b   : > { %2366 = vrot.lane.b32.xlu1 %v3648_v5, %s3579_s5  ;;  %3220 = vmatprep.subr.msk.bf16.mxu0 %vm304_vm0, %v839_v39  ;;  %v318_v45 = vsel %vm304_vm0, %v294_v41, 0 }
  0x9c   : > { %2364 = vrot.lane.b32.xlu0 %v3645_v4, %s3579_s5  ;;  %964 = vmatpush1.bf16.msra.mxu0 %v860_v40 }
  0x9d   : > { %v3857_v42 = vpop.permute.xlu1 %827  ;;  %v280_v43 = vpop.permute.xlu0 %279 }
  0x9e   : > { %v295_v44 = vsel %vm289_vm2, %v278_v37, %v280_v43 }
  0x9f   : > { %2061 = vrot.lane.b32.xlu1 %v3713_v14, %s3578_s27  ;;  %3196 = vmatprep.subr.msk.bf16.mxu1 %vm304_vm0, %v295_v44  ;;  %s3487_s27 = smul.u32 80, %s4325_s12 }
  0xa0   : > { %2368 = vrot.lane.b32.xlu0 %v3694_v12, %s3579_s5  ;;  %422 = vmatpush1.bf16.msra.mxu1 %v318_v45 }
  0xa1   : > { %v832_v46 = vpop.permute.xlu1 %831  ;;  %3221 = vmatmul.mubr.msk.bf16.vlgmr.msra.gmra.mrb[0].mxu0 %vm300_vm1, %v3821_v29  ;;  %v830_v47 = vpop.permute.xlu0 %829  ;;  %s4276_s30 = scalar_lea.vmem %s4319_s3, %s3487_s27 }
  0xa2   : > { %1081 = vmatprep.mubr.bf16.mxu0 %v3572_v0  ;;  %v842_v48 = vsel %vm833_vm3, %v3857_v42, %v830_v47  ;;  %v843_v49 = vsel %vm833_vm3, %v830_v47, %v832_v46 }
  0xa3   : > { %2374 = vrot.lane.b32.xlu1 %v3670_v10, %s3579_s5  ;;  %v872_v50 = vsel %vm304_vm0, %v842_v48, 0  ;;  %3224 = vmatprep.subr.msk.bf16.mxu0 %vm304_vm0, %v843_v49 }
  0xa4   : > { %2372 = vrot.lane.b32.xlu0 %v3664_v8, %s3579_s5  ;;  %1050 = vmatpush1.bf16.msra.mxu0 %v872_v50 }
  0xa5   : > { %v284_v51 = vpop.permute.xlu1 %283  ;;  %3197 = vmatmul.mubr.msk.bf16.vlgmr.msra.gmra.mrb[8].mxu1 %vm300_vm1, %v3805_v23  ;;  %v282_v52 = vpop.permute.xlu0 %281 }
  0xa6   : > { %496 = vmatprep.mubr.bf16.mxu1 %v3572_v0  ;;  %v296_v53 = vsel %vm289_vm2, %v280_v43, %v282_v52  ;;  %v297_v54 = vsel %vm289_vm2, %v282_v52, %v284_v51 }
  0xa7   : > { %2362 = vrot.lane.b32.xlu1 %v3667_v9, %s3579_s5  ;;  %v324_v55 = vsel %vm304_vm0, %v296_v53, 0  ;;  %3198 = vmatprep.subr.msk.bf16.mxu1 %vm304_vm0, %v297_v54 }
  0xa8   : > { %2376 = vrot.lane.b32.xlu0 %v3704_v13, %s3579_s5  ;;  %465 = vmatpush1.bf16.msra.mxu1 %v324_v55 }
  0xa9   : > { %v1123_v56 = vpop.permute.xlu1 %1122  ;;  %3225 = vmatmul.mubr.msk.bf16.vlgmr.msra.gmra.mrb[4].mxu0 %vm300_vm1, %v3821_v29  ;;  %v1121_v57 = vpop.permute.xlu0 %1120 }
  0xaa   : > { %1218 = vmatprep.mubr.bf16.mxu0 %v3572_v0  ;;  %v1143_v58 = vsel %vm1142_vm4, %v1121_v57, %v1123_v56 }
  0xab   : > { %2667 = vrot.lane.b32.xlu1 %v3642_v3, %s3580_s6  ;;  %v1157_v62 = vsel %vm304_vm0, %v1143_v58, 0 }
  0xac   : > { %2665 = vrot.lane.b32.xlu0 %v3635_v2, %s3580_s6 }
  0xad   : > { %v286_v59 = vpop.permute.xlu1 %285  ;;  %3199 = vmatmul.mubr.msk.bf16.vlgmr.msra.gmra.mrb[12].mxu1 %vm300_vm1, %v3805_v23  ;;  %v3899_v60 = vpop.permute.xlu0 %1124 }
  0xae   : > { %539 = vmatprep.mubr.bf16.mxu1 %v3572_v0  ;;  %v1144_v61 = vsel %vm1142_vm4, %v1123_v56, %v3899_v60  ;;  %v298_v6 = vsel %vm289_vm2, %v284_v51, %v286_v59 }
  0xaf   : > { %2370 = vrot.lane.b32.xlu1 %v3713_v14, %s3579_s5  ;;  %3229 = vmatprep.subr.msk.bf16.mxu0 %vm304_vm0, %v1144_v61  ;;  %v330_v17 = vsel %vm304_vm0, %v298_v6, 0 }
  0xb0   : > { %2669 = vrot.lane.b32.xlu0 %v3632_v1, %s3580_s6  ;;  %1187 = vmatpush1.bf16.msra.mxu0 %v1157_v62  ;;  %v4060_v62 = vld [vmem:[%s4317_s1 + $0x28] sm:$0x3f]  }
  0xb1   : > { %v3916_v11 = vpop.permute.xlu1 %1128  ;;  %v288_v15 = vpop.permute.xlu0 %287 }
  0xb2   : > { %v299_v16 = vsel %vm289_vm2, %v286_v59, %v288_v15 }
  0xb3   : > { %2675 = vrot.lane.b32.xlu1 %v3648_v5, %s3580_s6  ;;  %3200 = vmatprep.subr.msk.bf16.mxu1 %vm304_vm0, %v299_v16 }
  0xb4   : > { %3230 = vmatmul.mubr.msk.bf16.vlgmr.msra.gmra.mrb[8].mxu0 %vm300_vm1, %v3913_v63  ;;  %508 = vmatpush1.bf16.msra.mxu1 %v330_v17 }
  0xb5   : > { %v3925_v18 = vpop.permute.xlu1 %1132  ;;  %2673 = vrot.lane.b32.xlu0 %v3645_v4, %s3580_s6  ;;  %v1131_v19 = vpop.permute.xlu0 %1130  ;;  %1304 = vmatprep.mubr.bf16.mxu0 %v3572_v0 }
  0xb6   : > { %3203 = vmatprep.subr.msk.bf16.mxu1 %vm304_vm0, %v3642_v3  ;;  %v1147_v5 = vsel %vm1142_vm4, %v3916_v11, %v1131_v19  ;;  %v1148_v20 = vsel %vm1142_vm4, %v1131_v19, %v3925_v18 }
  0xb7   : > { %2671 = vrot.lane.b32.xlu1 %v3667_v9, %s3580_s6  ;;  %v1169_v4 = vsel %vm304_vm0, %v1147_v5, 0  ;;  %3201 = vmatmul.mubr.msk.bf16.vlgmr.msra.gmra.mrb[16].mxu1 %vm300_vm1, %v3805_v23 }
  0xb8   : > { %3233 = vmatprep.subr.msk.bf16.mxu0 %vm304_vm0, %v1148_v20  ;;  %589 = vmatpush1.bf16.msra.mxu1 %v559_v21 }
  0xb9   : > { %1273 = vmatpush1.bf16.msra.mxu0 %v1169_v4  ;;  %v1139_v3 = vpop.permute.xlu1 %1138  ;;  %2677 = vrot.lane.b32.xlu0 %v3694_v12, %s3580_s6  ;;  %v3946_v24 = vpop.permute.xlu0 %1136 }
  0xba   : > { %620 = vmatprep.mubr.bf16.mxu1 %v3572_v0  ;;  %3205 = vmatprep.subr.msk.bf16.mxu1 %vm304_vm0, %v3667_v9  ;;  %v1151_v2 = vsel %vm1142_vm4, %v3946_v24, %v1139_v3  ;;  %v565_v9 = vsel %vm304_vm0, %v3632_v1, 0 }
  0xbb   : > { %2683 = vrot.lane.b32.xlu1 %v3670_v10, %s3580_s6  ;;  %v1181_v10 = vsel %vm304_vm0, %v1151_v2, 0 }
  0xbc   : > { %3234 = vmatmul.mubr.msk.bf16.vlgmr.msra.gmra.mrb[0].mxu0 %vm300_vm1, %v3913_v63 }
  0xbd   : > { %v1430_v23 = vpop.permute.xlu1 %1429  ;;  %2681 = vrot.lane.b32.xlu0 %v3664_v8, %s3580_s6  ;;  %1390 = vmatprep.mubr.bf16.mxu0 %v3572_v0  ;;  %v1141_v25 = vpop.permute.xlu0 %1140 }
  0xbe   : > { %v1152_v26 = vsel %vm1142_vm4, %v1139_v3, %v1141_v25 }
  0xbf   : > { %2679 = vrot.lane.b32.xlu1 %v3713_v14, %s3580_s6  ;;  %3204 = vmatmul.mubr.msk.bf16.vlgmr.msra.gmra.mrb[0].mxu1 %vm300_vm1, %v3659_v7 }
  0xc0   : > { %3237 = vmatprep.subr.msk.bf16.mxu0 %vm304_vm0, %v1152_v26  ;;  %632 = vmatpush1.bf16.msra.mxu1 %v565_v9 }
  0xc1   : > { %1359 = vmatpush1.bf16.msra.mxu0 %v1181_v10  ;;  %v3969_v8 = vpop.permute.xlu1 %1433  ;;  %2685 = vrot.lane.b32.xlu0 %v3704_v13, %s3580_s6  ;;  %v1432_v27 = vpop.permute.xlu0 %1431 }
  0xc2   : > { %663 = vmatprep.mubr.bf16.mxu1 %v3572_v0  ;;  %v1452_v1 = vsel %vm1451_vm5, %v1430_v23, %v1432_v27  ;;  %v1453_v28 = vsel %vm1451_vm5, %v1432_v27, %v3969_v8  ;;  %3209 = vmatprep.subr.msk.bf16.mxu1 %vm304_vm0, %v3713_v14  ;;  %v3995_v14 = vld [vmem:[%s4317_s1 + $0x20] sm:$0x3f]  }
  0xc3   : > { %v1466_v30 = vsel %vm304_vm0, %v1452_v1, 0  ;;  %3242 = vmatprep.subr.msk.bf16.mxu0 %vm304_vm0, %v1453_v28 }
  0xc4   : > { %3238 = vmatmul.mubr.msk.bf16.vlgmr.msra.gmra.mrb[4].mxu0 %vm300_vm1, %v3913_v63 }
  0xc5   : > { %v1440_v13 = vpop.permute.xlu1 %1439  ;;  %1496 = vmatpush1.bf16.msra.mxu0 %v1466_v30  ;;  %1527 = vmatprep.mubr.bf16.mxu0 %v3572_v0  ;;  %v3984_v31 = vpop.permute.xlu0 %1437 }
  0xc6   : > { %v1456_v33 = vsel %vm1451_vm5, %v3984_v31, %v1440_v13 }
  0xc7   : > { %3206 = vmatmul.mubr.msk.bf16.vlgmr.msra.gmra.mrb[4].mxu1 %vm300_vm1, %v3659_v7  ;;  %v1478_v36 = vsel %vm304_vm0, %v1456_v33, 0  ;;  %v4122_v33 = vld [vmem:[%s4317_s1 + $0x30] sm:$0x3f]  }
  0xc8   : > { %718 = vmatpush1.bf16.msra.mxu1 %v577_v32  ;;  %749 = vmatprep.mubr.bf16.mxu1 %v3572_v0 }
  0xc9   : > { %v818_v34 = vpop.permute.xlu1 %817  ;;  %v4001_v37 = vpop.permute.xlu0 %1441 }
  0xca   : > { %v837_v12 = vsel %vm833_vm3, %v818_v34, %v3834_v35  ;;  %v1457_v39 = vsel %vm1451_vm5, %v1440_v13, %v4001_v37  ;;  %v836_v40 = vsel %vm833_vm3, %v3800_v22, %v818_v34 }
  0xcb   : > { %3218 = vmatprep.subr.msk.bf16.mxu1 %vm304_vm0, %v837_v12  ;;  %3246 = vmatprep.subr.msk.bf16.mxu0 %vm304_vm0, %v1457_v39  ;;  %v854_v44 = vsel %vm304_vm0, %v836_v40, 0  ;;  %v2966_v40 = vld [vmem:[%s4318_s2] sm:$0xff] }
  0xcc   : > { %3243 = vmatmul.mubr.msk.bf16.vlgmr.msra.gmra.mrb[8].mxu0 %vm300_vm1, %v3995_v14  ;;  %2970 = vperm.xlu0 %3521, %v2966_v40  }
  0xcd   : > { %v1448_v41 = vpop.permute.xlu1 %1447  ;;  %1582 = vmatpush1.bf16.msra.mxu0 %v1478_v36  ;;  %1613 = vmatprep.mubr.bf16.mxu0 %v3572_v0  ;;  %v4012_v35 = vpop.permute.xlu0 %1445 }
  0xce   : > { %v1460_v43 = vsel %vm1451_vm5, %v4012_v35, %v1448_v41 }
  0xcf   : > { %3210 = vmatmul.mubr.msk.bf16.vlgmr.msra.gmra.mrb[12].mxu1 %vm300_vm1, %v3659_v7  ;;  %v1490_v22 = vsel %vm304_vm0, %v1460_v43, 0 }
  0xd0   : > { %921 = vmatpush1.bf16.msra.mxu1 %v854_v44  ;;  %952 = vmatprep.mubr.bf16.mxu1 %v3572_v0 }
  0xd1   : > { %v826_v45 = vpop.permute.xlu1 %825  ;;  %v1450_v47 = vpop.permute.xlu0 %1449 }
  0xd2   : > { %v841_v46 = vsel %vm833_vm3, %v826_v45, %v3857_v42  ;;  %v1461_v48 = vsel %vm1451_vm5, %v1448_v41, %v1450_v47  ;;  %v840_v7 = vsel %vm833_vm3, %v3845_v38, %v826_v45  ;;  %v2967_v41 = vld [vmem:[%s4318_s2 + $0x8] sm:$0xf] }
  0xd3   : > { %3222 = vmatprep.subr.msk.bf16.mxu1 %vm304_vm0, %v841_v46  ;;  %3250 = vmatprep.subr.msk.bf16.mxu0 %vm304_vm0, %v1461_v48  ;;  %v866_v51 = vsel %vm304_vm0, %v840_v7, 0 }
  0xd4   : > { %3247 = vmatmul.mubr.msk.bf16.vlgmr.msra.gmra.mrb[0].mxu0 %vm300_vm1, %v3995_v14  ;;  %2975 = vperm.xlu1 %3522, %v2967_v41  }
  0xd5   : > { %v1741_v49 = vpop.permute.xlu1 %1740  ;;  %1668 = vmatpush1.bf16.msra.mxu0 %v1490_v22  ;;  %1699 = vmatprep.mubr.bf16.mxu0 %v3572_v0  ;;  %v1739_v50 = vpop.permute.xlu0 %1738 }
  0xd6   : > { %v1761_v42 = vsel %vm1760_vm6, %v1739_v50, %v1741_v49 }
  0xd7   : > { %3219 = vmatmul.mubr.msk.bf16.vlgmr.msra.gmra.mrb[4].mxu1 %vm300_vm1, %v3821_v29  ;;  %v1775_v53 = vsel %vm304_vm0, %v1761_v42, 0 }
  0xd8   : > { %1007 = vmatpush1.bf16.msra.mxu1 %v866_v51  ;;  %1038 = vmatprep.mubr.bf16.mxu1 %v3572_v0 }
  0xd9   : > { %v1127_v52 = vpop.permute.xlu1 %1126  ;;  %v4039_v54 = vpop.permute.xlu0 %1742 }
  0xda   : > { %v1146_v38 = vsel %vm1142_vm4, %v1127_v52, %v3916_v11  ;;  %v1762_v55 = vsel %vm1760_vm6, %v1741_v49, %v4039_v54  ;;  %v1145_v56 = vsel %vm1142_vm4, %v3899_v60, %v1127_v52 }
  0xdb   : > { %3231 = vmatprep.subr.msk.bf16.mxu1 %vm304_vm0, %v1146_v38  ;;  %3255 = vmatprep.subr.msk.bf16.mxu0 %vm304_vm0, %v1762_v55  ;;  %v1163_v61 = vsel %vm304_vm0, %v1145_v56, 0 }
  0xdc   : > { %3251 = vmatmul.mubr.msk.bf16.vlgmr.msra.gmra.mrb[4].mxu0 %vm300_vm1, %v3995_v14 }
  0xdd   : > { %v1749_v57 = vpop.permute.xlu1 %1748  ;;  %1805 = vmatpush1.bf16.msra.mxu0 %v1775_v53  ;;  %1836 = vmatprep.mubr.bf16.mxu0 %v3572_v0  ;;  %v4050_v58 = vpop.permute.xlu0 %1746 }
  0xde   : > { %v1765_v59 = vsel %vm1760_vm6, %v4050_v58, %v1749_v57 }
  0xdf   : > { %3223 = vmatmul.mubr.msk.bf16.vlgmr.msra.gmra.mrb[12].mxu1 %vm300_vm1, %v3821_v29  ;;  %v1787_v6 = vsel %vm304_vm0, %v1765_v59, 0 }
  0xe0   : > { %1230 = vmatpush1.bf16.msra.mxu1 %v1163_v61  ;;  %1261 = vmatprep.mubr.bf16.mxu1 %v3572_v0 }
  0xe1   : > { %v1135_v60 = vpop.permute.xlu1 %1134  ;;  %v4066_v15 = vpop.permute.xlu0 %1750 }
  0xe2   : > { %v1150_v11 = vsel %vm1142_vm4, %v1135_v60, %v3946_v24  ;;  %v1766_v16 = vsel %vm1760_vm6, %v1749_v57, %v4066_v15  ;;  %v1149_v29 = vsel %vm1142_vm4, %v3925_v18, %v1135_v60 }
  0xe3   : > { %3235 = vmatprep.subr.msk.bf16.mxu1 %vm304_vm0, %v1150_v11  ;;  %3259 = vmatprep.subr.msk.bf16.mxu0 %vm304_vm0, %v1766_v16  ;;  %v1175_v20 = vsel %vm304_vm0, %v1149_v29, 0 }
  0xe4   : > { %3256 = vmatmul.mubr.msk.bf16.vlgmr.msra.gmra.mrb[8].mxu0 %vm300_vm1, %v4060_v62 }
  0xe5   : > { %v1757_v17 = vpop.permute.xlu1 %1756  ;;  %1891 = vmatpush1.bf16.msra.mxu0 %v1787_v6  ;;  %1922 = vmatprep.mubr.bf16.mxu0 %v3572_v0  ;;  %v4077_v19 = vpop.permute.xlu0 %1754  ;;  %v4183_v6 = vld [vmem:[%s4317_s1 + $0x38] sm:$0x3f]  }
  0xe6   : > { %v1769_v5 = vsel %vm1760_vm6, %v4077_v19, %v1757_v17 }
  0xe7   : > { %3232 = vmatmul.mubr.msk.bf16.vlgmr.msra.gmra.mrb[4].mxu1 %vm300_vm1, %v3913_v63  ;;  %v1799_v18 = vsel %vm304_vm0, %v1769_v5, 0 }
  0xe8   : > { %1316 = vmatpush1.bf16.msra.mxu1 %v1175_v20  ;;  %1347 = vmatprep.mubr.bf16.mxu1 %v3572_v0 }
  0xe9   : > { %v1436_v21 = vpop.permute.xlu1 %1435  ;;  %v1759_v3 = vpop.permute.xlu0 %1758 }
  0xea   : > { %v1455_v4 = vsel %vm1451_vm5, %v1436_v21, %v3984_v31  ;;  %v1770_v24 = vsel %vm1760_vm6, %v1757_v17, %v1759_v3  ;;  %v1454_v2 = vsel %vm1451_vm5, %v3969_v8, %v1436_v21 }
  0xeb   : > { %3244 = vmatprep.subr.msk.bf16.mxu1 %vm304_vm0, %v1455_v4  ;;  %3263 = vmatprep.subr.msk.bf16.mxu0 %vm304_vm0, %v1770_v24  ;;  %v1472_v9 = vsel %vm304_vm0, %v1454_v2, 0 }
  0xec   : > { %3260 = vmatmul.mubr.msk.bf16.vlgmr.msra.gmra.mrb[0].mxu0 %vm300_vm1, %v4060_v62 }
  0xed   : > { %v2050_v23 = vpop.permute.xlu1 %2049  ;;  %1977 = vmatpush1.bf16.msra.mxu0 %v1799_v18  ;;  %2008 = vmatprep.mubr.bf16.mxu0 %v3572_v0  ;;  %v2048_v25 = vpop.permute.xlu0 %2047 }
  0xee   : > { %v2070_v26 = vsel %vm2069_vm7, %v2048_v25, %v2050_v23 }
  0xef   : > { %3236 = vmatmul.mubr.msk.bf16.vlgmr.msra.gmra.mrb[12].mxu1 %vm300_vm1, %v3913_v63  ;;  %v2084_v27 = vsel %vm304_vm0, %v2070_v26, 0 }
  0xf0   : > { %1539 = vmatpush1.bf16.msra.mxu1 %v1472_v9  ;;  %1570 = vmatprep.mubr.bf16.mxu1 %v3572_v0 }
  0xf1   : > { %v1444_v10 = vpop.permute.xlu1 %1443  ;;  %v4104_v1 = vpop.permute.xlu0 %2051 }
  0xf2   : > { %v1459_v8 = vsel %vm1451_vm5, %v1444_v10, %v4012_v35  ;;  %v2071_v28 = vsel %vm2069_vm7, %v2050_v23, %v4104_v1  ;;  %v1458_v63 = vsel %vm1451_vm5, %v4001_v37, %v1444_v10 }
  0xf3   : > { %3248 = vmatprep.subr.msk.bf16.mxu1 %vm304_vm0, %v1459_v8  ;;  %3268 = vmatprep.subr.msk.bf16.mxu0 %vm304_vm0, %v2071_v28  ;;  %v1484_v32 = vsel %vm304_vm0, %v1458_v63, 0 }
  0xf4   : > { %3264 = vmatmul.mubr.msk.bf16.vlgmr.msra.gmra.mrb[4].mxu0 %vm300_vm1, %v4060_v62 }
  0xf5   : > { %v2058_v30 = vpop.permute.xlu1 %2057  ;;  %2114 = vmatpush1.bf16.msra.mxu0 %v2084_v27  ;;  %2145 = vmatprep.mubr.bf16.mxu0 %v3572_v0  ;;  %v2056_v13 = vpop.permute.xlu0 %2055 }
  0xf6   : > { %v2074_v31 = vsel %vm2069_vm7, %v2056_v13, %v2058_v30 }
  0xf7   : > { %3245 = vmatmul.mubr.msk.bf16.vlgmr.msra.gmra.mrb[4].mxu1 %vm300_vm1, %v3995_v14  ;;  %v2096_v36 = vsel %vm304_vm0, %v2074_v31, 0 }
  0xf8   : > { %1625 = vmatpush1.bf16.msra.mxu1 %v1484_v32  ;;  %1656 = vmatprep.mubr.bf16.mxu1 %v3572_v0 }
  0xf9   : > { %v1745_v34 = vpop.permute.xlu1 %1744  ;;  %v4128_v37 = vpop.permute.xlu0 %2059 }
  0xfa   : > { %v1764_v12 = vsel %vm1760_vm6, %v1745_v34, %v4050_v58  ;;  %v2075_v39 = vsel %vm2069_vm7, %v2058_v30, %v4128_v37  ;;  %v1763_v35 = vsel %vm1760_vm6, %v4039_v54, %v1745_v34  ;;  %v3547_v34 = vld [vmem:[%s4317_s1 + $0x40] sm:$0x3f]  }
  0xfb   : > { %3257 = vmatprep.subr.msk.bf16.mxu1 %vm304_vm0, %v1764_v12  ;;  %3272 = vmatprep.subr.msk.bf16.mxu0 %vm304_vm0, %v2075_v39  ;;  %v1781_v22 = vsel %vm304_vm0, %v1763_v35, 0 }
  0xfc   : > { %3269 = vmatmul.mubr.msk.bf16.vlgmr.msra.gmra.mrb[8].mxu0 %vm300_vm1, %v4122_v33 }
  0xfd   : > { %v2066_v43 = vpop.permute.xlu1 %2065  ;;  %2200 = vmatpush1.bf16.msra.mxu0 %v2096_v36  ;;  %2231 = vmatprep.mubr.bf16.mxu0 %v3572_v0 }
  0xfe   : > { %v2064_v44 = vpop.permute.xlu0 %2063 }
  0xff   : > { %v2078_v45 = vsel %vm2069_vm7, %v2064_v44, %v2066_v43  ;;  %3249 = vmatmul.mubr.msk.bf16.vlgmr.msra.gmra.mrb[12].mxu1 %vm300_vm1, %v3995_v14 }
 0x100   : > { %1848 = vmatpush1.bf16.msra.mxu1 %v1781_v22  ;;  %1879 = vmatprep.mubr.bf16.mxu1 %v3572_v0  ;;  %v2108_v47 = vsel %vm304_vm0, %v2078_v45, 0 }
 0x101   : > { %v1753_v46 = vpop.permute.xlu1 %1752 }
 0x102   : > { %v1768_v48 = vsel %vm1760_vm6, %v1753_v46, %v4077_v19  ;;  %v2068_v7 = vpop.permute.xlu0 %2067  ;;  %v1767_v14 = vsel %vm1760_vm6, %v4066_v15, %v1753_v46 }
 0x103   : > { %v2079_v49 = vsel %vm2069_vm7, %v2066_v43, %v2068_v7  ;;  %3261 = vmatprep.subr.msk.bf16.mxu1 %vm304_vm0, %v1768_v48  ;;  %v1793_v52 = vsel %vm304_vm0, %v1767_v14, 0 }
 0x104   : > { %3273 = vmatmul.mubr.msk.bf16.vlgmr.msra.gmra.mrb[0].mxu0 %vm300_vm1, %v4122_v33  ;;  %3276 = vmatprep.subr.msk.bf16.mxu0 %vm304_vm0, %v2079_v49 }
 0x105   : > { %v2359_v50 = vpop.permute.xlu1 %2358  ;;  %2286 = vmatpush1.bf16.msra.mxu0 %v2108_v47  ;;  %2317 = vmatprep.mubr.bf16.mxu0 %v3572_v0 }
 0x106   : > { %v2357_v42 = vpop.permute.xlu0 %2356 }
 0x107   : > { %v2379_v51 = vsel %vm2378_vm8, %v2357_v42, %v2359_v50  ;;  %3258 = vmatmul.mubr.msk.bf16.vlgmr.msra.gmra.mrb[4].mxu1 %vm300_vm1, %v4060_v62 }
 0x108   : > { %1934 = vmatpush1.bf16.msra.mxu1 %v1793_v52  ;;  %1965 = vmatprep.mubr.bf16.mxu1 %v3572_v0  ;;  %v2393_v38 = vsel %vm304_vm0, %v2379_v51, 0 }
 0x109   : > { %v2054_v53 = vpop.permute.xlu1 %2053 }
 0x10a   : > { %v2073_v54 = vsel %vm2069_vm7, %v2054_v53, %v2056_v13  ;;  %v2361_v55 = vpop.permute.xlu0 %2360  ;;  %v2072_v57 = vsel %vm2069_vm7, %v4104_v1, %v2054_v53 }
 0x10b   : > { %v2380_v56 = vsel %vm2378_vm8, %v2359_v50, %v2361_v55  ;;  %3270 = vmatprep.subr.msk.bf16.mxu1 %vm304_vm0, %v2073_v54  ;;  %v2090_v60 = vsel %vm304_vm0, %v2072_v57, 0 }
 0x10c   : > { %3277 = vmatmul.mubr.msk.bf16.vlgmr.msra.gmra.mrb[4].mxu0 %vm300_vm1, %v4122_v33  ;;  %3281 = vmatprep.subr.msk.bf16.mxu0 %vm304_vm0, %v2380_v56 }
 0x10d   : > { %v2367_v58 = vpop.permute.xlu1 %2366  ;;  %2423 = vmatpush1.bf16.msra.mxu0 %v2393_v38  ;;  %2454 = vmatprep.mubr.bf16.mxu0 %v3572_v0 }
 0x10e   : > { %v2365_v59 = vpop.permute.xlu0 %2364 }
 0x10f   : > { %v2383_v61 = vsel %vm2378_vm8, %v2365_v59, %v2367_v58  ;;  %3262 = vmatmul.mubr.msk.bf16.vlgmr.msra.gmra.mrb[12].mxu1 %vm300_vm1, %v4060_v62 }
 0x110   : > { %2157 = vmatpush1.bf16.msra.mxu1 %v2090_v60  ;;  %2188 = vmatprep.mubr.bf16.mxu1 %v3572_v0  ;;  %v2405_v15 = vsel %vm304_vm0, %v2383_v61, 0 }
 0x111   : > { %v2062_v11 = vpop.permute.xlu1 %2061 }
 0x112   : > { %v2077_v16 = vsel %vm2069_vm7, %v2062_v11, %v2064_v44  ;;  %v2369_v29 = vpop.permute.xlu0 %2368  ;;  %v2076_v62 = vsel %vm2069_vm7, %v4128_v37, %v2062_v11 }
 0x113   : > { %v2384_v17 = vsel %vm2378_vm8, %v2367_v58, %v2369_v29  ;;  %3274 = vmatprep.subr.msk.bf16.mxu1 %vm304_vm0, %v2077_v16  ;;  %v2102_v21 = vsel %vm304_vm0, %v2076_v62, 0 }
 0x114   : > { %3282 = vmatmul.mubr.msk.bf16.vlgmr.msra.gmra.mrb[8].mxu0 %vm300_vm1, %v4183_v6  ;;  %3285 = vmatprep.subr.msk.bf16.mxu0 %vm304_vm0, %v2384_v17 }
 0x115   : > { %v2375_v19 = vpop.permute.xlu1 %2374  ;;  %2509 = vmatpush1.bf16.msra.mxu0 %v2405_v15  ;;  %2540 = vmatprep.mubr.bf16.mxu0 %v3572_v0 }
 0x116   : > { %v2373_v5 = vpop.permute.xlu0 %2372 }
 0x117   : > { %v2387_v20 = vsel %vm2378_vm8, %v2373_v5, %v2375_v19  ;;  %3271 = vmatmul.mubr.msk.bf16.vlgmr.msra.gmra.mrb[4].mxu1 %vm300_vm1, %v4122_v33 }
 0x118   : > { %2243 = vmatpush1.bf16.msra.mxu1 %v2102_v21  ;;  %2274 = vmatprep.mubr.bf16.mxu1 %v3572_v0  ;;  %v2417_v4 = vsel %vm304_vm0, %v2387_v20, 0 }
 0x119   : > { %v2363_v18 = vpop.permute.xlu1 %2362 }
 0x11a   : > { %v2382_v3 = vsel %vm2378_vm8, %v2363_v18, %v2365_v59  ;;  %v2377_v24 = vpop.permute.xlu0 %2376  ;;  %v2381_v23 = vsel %vm2378_vm8, %v2361_v55, %v2363_v18 }
 0x11b   : > { %v2388_v2 = vsel %vm2378_vm8, %v2375_v19, %v2377_v24  ;;  %3283 = vmatprep.subr.msk.bf16.mxu1 %vm304_vm0, %v2382_v3  ;;  %v2399_v10 = vsel %vm304_vm0, %v2381_v23, 0 }
 0x11c   : > { %3286 = vmatmul.mubr.msk.bf16.vlgmr.msra.gmra.mrb[0].mxu0 %vm300_vm1, %v4183_v6  ;;  %3289 = vmatprep.subr.msk.bf16.mxu0 %vm304_vm0, %v2388_v2 }
 0x11d   : > { %v2668_v25 = vpop.permute.xlu1 %2667  ;;  %2595 = vmatpush1.bf16.msra.mxu0 %v2417_v4  ;;  %2626 = vmatprep.mubr.bf16.mxu0 %v3572_v0 }
 0x11e   : > { %v2666_v26 = vpop.permute.xlu0 %2665 }
 0x11f   : > { %v2688_v9 = vsel %vm2687_vm9, %v2666_v26, %v2668_v25  ;;  %3275 = vmatmul.mubr.msk.bf16.vlgmr.msra.gmra.mrb[12].mxu1 %vm300_vm1, %v4122_v33 }
 0x120   : > { %2466 = vmatpush1.bf16.msra.mxu1 %v2399_v10  ;;  %2497 = vmatprep.mubr.bf16.mxu1 %v3572_v0  ;;  %v2702_v8 = vsel %vm304_vm0, %v2688_v9, 0 }
 0x121   : > { %v2371_v27 = vpop.permute.xlu1 %2370 }
 0x122   : > { %v2386_v1 = vsel %vm2378_vm8, %v2371_v27, %v2373_v5  ;;  %v2670_v28 = vpop.permute.xlu0 %2669  ;;  %v2385_v30 = vsel %vm2378_vm8, %v2369_v29, %v2371_v27 }
 0x123   : > { %v2689_v63 = vsel %vm2687_vm9, %v2668_v25, %v2670_v28  ;;  %3287 = vmatprep.subr.msk.bf16.mxu1 %vm304_vm0, %v2386_v1  ;;  %v2411_v32 = vsel %vm304_vm0, %v2385_v30, 0 }
 0x124   : > { %3290 = vmatmul.mubr.msk.bf16.vlgmr.msra.gmra.mrb[4].mxu0 %vm300_vm1, %v4183_v6  ;;  %3294 = vmatprep.subr.msk.bf16.mxu0 %vm304_vm0, %v2689_v63 }
 0x125   : > { %v2676_v13 = vpop.permute.xlu1 %2675  ;;  %2732 = vmatpush1.bf16.msra.mxu0 %v2702_v8  ;;  %2763 = vmatprep.mubr.bf16.mxu0 %v3572_v0 }
 0x127   : > { %v2674_v31 = vpop.permute.xlu0 %2673  ;;  %3284 = vmatmul.mubr.msk.bf16.vlgmr.msra.gmra.mrb[4].mxu1 %vm300_vm1, %v4183_v6 }
 0x128   : > { %v2692_v33 = vsel %vm2687_vm9, %v2674_v31, %v2676_v13  ;;  %2552 = vmatpush1.bf16.msra.mxu1 %v2411_v32  ;;  %2583 = vmatprep.mubr.bf16.mxu1 %v3572_v0 }
 0x129   : > { %v2672_v36 = vpop.permute.xlu1 %2671  ;;  %v2714_v37 = vsel %vm304_vm0, %v2692_v33, 0 }
 0x12a   : > { %v2691_v12 = vsel %vm2687_vm9, %v2672_v36, %v2674_v31  ;;  %v2690_v41 = vsel %vm2687_vm9, %v2670_v28, %v2672_v36 }
 0x12b   : > { %v2678_v39 = vpop.permute.xlu0 %2677  ;;  %3296 = vmatprep.subr.msk.bf16.mxu1 %vm304_vm0, %v2691_v12  ;;  %v2708_v44 = vsel %vm304_vm0, %v2690_v41, 0 }
 0x12c   : > { %3295 = vmatmul.mubr.msk.bf16.vlgmr.msra.gmra.mrb[8].mxu0 %vm300_vm1, %v3547_v34  ;;  %v2693_v40 = vsel %vm2687_vm9, %v2676_v13, %v2678_v39 }
 0x12d   : > { %v2684_v35 = vpop.permute.xlu1 %2683  ;;  %3298 = vmatprep.subr.msk.bf16.mxu0 %vm304_vm0, %v2693_v40  ;;  %2849 = vmatprep.mubr.bf16.mxu0 %v3572_v0 }
 0x12e   : > { %2818 = vmatpush1.bf16.msra.mxu0 %v2714_v37 }
 0x12f   : > { %v2682_v43 = vpop.permute.xlu0 %2681  ;;  %3288 = vmatmul.mubr.msk.bf16.vlgmr.msra.gmra.mrb[12].mxu1 %vm300_vm1, %v4183_v6 }
 0x130   : > { %v2696_v45 = vsel %vm2687_vm9, %v2682_v43, %v2684_v35  ;;  %2775 = vmatpush1.bf16.msra.mxu1 %v2708_v44  ;;  %2806 = vmatprep.mubr.bf16.mxu1 %v3572_v0 }
 0x131   : > { %v2680_v22 = vpop.permute.xlu1 %2679  ;;  %v2726_v47 = vsel %vm304_vm0, %v2696_v45, 0 }
 0x132   : > { %v2695_v46 = vsel %vm2687_vm9, %v2680_v22, %v2682_v43  ;;  %v2694_v49 = vsel %vm2687_vm9, %v2678_v39, %v2680_v22 }
 0x133   : > { %v2686_v48 = vpop.permute.xlu0 %2685  ;;  %3300 = vmatprep.subr.msk.bf16.mxu1 %vm304_vm0, %v2695_v46  ;;  %v2720_v14 = vsel %vm304_vm0, %v2694_v49, 0 }
 0x134   : > { %3299 = vmatmul.mubr.msk.bf16.vlgmr.msra.gmra.mrb[0].mxu0 %vm300_vm1, %v3547_v34  ;;  %v2697_v7 = vsel %vm2687_vm9, %v2684_v35, %v2686_v48 }
 0x135   : > { %3302 = vmatprep.subr.msk.bf16.mxu0 %vm304_vm0, %v2697_v7  ;;  %2935 = vmatprep.mubr.bf16.mxu0 %v3572_v0 }
 0x136   : > { %2904 = vmatpush1.bf16.msra.mxu0 %v2726_v47 }
 0x137   : > { %3297 = vmatmul.mubr.msk.bf16.vlgmr.msra.gmra.mrb[4].mxu1 %vm300_vm1, %v3547_v34 }
 0x138   : > { %2861 = vmatpush1.bf16.msra.mxu1 %v2720_v14  ;;  %2892 = vmatprep.mubr.bf16.mxu1 %v3572_v0 }
 0x13c   : > { %3303 = vmatmul.mubr.msk.bf16.vlgmr.msra.gmra.mrb[4].mxu0 %vm300_vm1, %v3547_v34 }
 0x13f   : > { %3301 = vmatmul.mubr.msk.bf16.vlgmr.msra.gmra.mrb[12].mxu1 %vm300_vm1, %v3547_v34 }
 0x14b   : > { %v4264_v61 = vpop.permute.xlu0 %2970 }
 0x153   : > { %v4266_v16 = vpop.permute.xlu1 %2975 }
 0x178   : > { %v455_v50 = vpop.f32.mrb[8].mxu1 }
 0x179   : > { %v457_v42 = vpop.f32.mrb[9].mxu1 }
 0x17a   : > { %v459_v51 = vpop.f32.mrb[10].mxu1 }
 0x17b   : > { %v461_v52 = vpop.f32.mrb[11].mxu1 }
 0x18a   : > { %v541_v53 = vpop.f32.mrb[16].mxu1 }
 0x18b   : > { %v4258_v38 = vpop.f32.mrb[17].mxu1 }
 0x18c   : > { %v4260_v54 = vpop.f32.mrb[18].mxu1 }
 0x18d   : > { %v4262_v55 = vpop.f32.mrb[19].mxu1 }
 0x192   : > { %v622_v56 = vpop.f32.mrb[0].mxu1 }
 0x193   : > { %v624_v57 = vpop.f32.mrb[1].mxu1 }
 0x194   : > { %v626_v58 = vpop.f32.mrb[2].mxu1 }
 0x195   : > { %v628_v0 = vpop.f32.mrb[3].mxu1 }
 0x1ff   : > { %v2765_v59 = vpop.f32.mrb[8].mxu0 }
 0x200   : > { %v3326_v60 = vadd.f32 %v2765_v59, %v622_v56  ;;  %v2767_v6 = vpop.f32.mrb[9].mxu0 }
 0x201   : > { %v3327_v11 = vadd.f32 %v2767_v6, %v624_v57  ;;  %v2769_v15 = vpop.f32.mrb[10].mxu0 }
 0x202   : > { %v3328_v29 = vadd.f32 %v2769_v15, %v626_v58  ;;  %v2978_v17 = vadd.f32 %v3326_v60, %v4264_v61  ;;  %v2771_v62 = vpop.f32.mrb[11].mxu0 }
 0x203   : > { %v2979_v19 = vadd.f32 %v3327_v11, %v4264_v61  ;;  %v3329_v5 = vadd.f32 %v2771_v62, %v628_v0 }
 0x204   : > { %v2998_v20 = vmax.f32 %v2978_v17, 0.0  ;;  %v2988_v21 = vadd.f32 %v3328_v29, %v4266_v16 }
 0x205   : > { %v2999_v18 = vmax.f32 %v2979_v19, 0.0  ;;  %v2989_v4 = vadd.f32 %v3329_v5, %v4266_v16 }
 0x206   : > { %v3008_v3 = vmax.f32 %v2988_v21, 0.0 }
 0x207   : > { %v3316_v24 = vpack.c.bf16 %v2999_v18, %v2998_v20  ;;  %v3009_v2 = vmax.f32 %v2989_v4, 0.0  ;;  %v2851_v23 = vpop.f32.mrb[0].mxu0 }
 0x208   : > { %v3330_v25 = vadd.f32 %v2851_v23, %v455_v50  ;;  %v2853_v26 = vpop.f32.mrb[1].mxu0 }
 0x209   : > { %3078 = vst [vmem:[%s4276_s30] sm:$0xff] %v3316_v24  ;;  %v3321_v9 = vpack.c.bf16 %v3009_v2, %v3008_v3  ;;  %v3331_v10 = vadd.f32 %v2853_v26, %v457_v42  ;;  %v2855_v27 = vpop.f32.mrb[2].mxu0 }
 0x20a   : > { %v2982_v8 = vadd.f32 %v3330_v25, %v4264_v61  ;;  %v3332_v1 = vadd.f32 %v2855_v27, %v459_v51  ;;  %v2857_v28 = vpop.f32.mrb[3].mxu0  ;;  %v2808_v13 = vpop.f32.mrb[4].mxu1 }
 0x20b   : > { %3083 = vst [vmem:[%s4276_s30 + $0x28] sm:$0x33] %v3321_v9  ;;  %v2983_v63 = vadd.f32 %v3331_v10, %v4264_v61  ;;  %v3333_v30 = vadd.f32 %v2857_v28, %v461_v52  ;;  %v2980_v33 = vadd.f32 %v4264_v61, %v2808_v13  ;;  %v2810_v34 = vpop.f32.mrb[5].mxu1 }
 0x20c   : > { %v3002_v31 = vmax.f32 %v2982_v8, 0.0  ;;  %v2992_v32 = vadd.f32 %v3332_v1, %v4266_v16  ;;  %v2981_v37 = vadd.f32 %v4264_v61, %v2810_v34  ;;  %v2812_v39 = vpop.f32.mrb[6].mxu1 }
 0x20d   : > { %v3003_v36 = vmax.f32 %v2983_v63, 0.0  ;;  %v2993_v12 = vadd.f32 %v3333_v30, %v4266_v16  ;;  %v3000_v41 = vmax.f32 %v2980_v33, 0.0  ;;  %v2990_v35 = vadd.f32 %v4266_v16, %v2812_v39  ;;  %v2814_v43 = vpop.f32.mrb[7].mxu1 }
 0x20e   : > { %v3012_v40 = vmax.f32 %v2992_v32, 0.0  ;;  %v3001_v22 = vmax.f32 %v2981_v37, 0.0  ;;  %v2991_v46 = vadd.f32 %v4266_v16, %v2814_v43 }
 0x20f   : > { %v3318_v44 = vpack.c.bf16 %v3003_v36, %v3002_v31  ;;  %v3013_v45 = vmax.f32 %v2993_v12, 0.0  ;;  %v2937_v47 = vpop.f32.mrb[4].mxu0  ;;  %v3010_v48 = vmax.f32 %v2990_v35, 0.0 }
 0x210   : > { %v3334_v7 = vadd.f32 %v2937_v47, %v541_v53  ;;  %v2939_v49 = vpop.f32.mrb[5].mxu0  ;;  %v3317_v50 = vpack.c.bf16 %v3001_v22, %v3000_v41  ;;  %v3011_v42 = vmax.f32 %v2991_v46, 0.0 }
 0x211   : > { %3080 = vst [vmem:[%s4276_s30 + $0x10] sm:$0xff] %v3318_v44  ;;  %v3323_v14 = vpack.c.bf16 %v3013_v45, %v3012_v40  ;;  %v3335_v51 = vadd.f32 %v2939_v49, %v4258_v38  ;;  %v2941_v52 = vpop.f32.mrb[6].mxu0 }
 0x212   : > { %v2986_v56 = vadd.f32 %v3334_v7, %v4264_v61  ;;  %v3336_v57 = vadd.f32 %v2941_v52, %v4260_v54  ;;  %v2943_v58 = vpop.f32.mrb[7].mxu0  ;;  %3079 = vst [vmem:[%s4276_s30 + $0x8] sm:$0xff] %v3317_v50  ;;  %v3322_v0 = vpack.c.bf16 %v3011_v42, %v3010_v48  ;;  %v2894_v60 = vpop.f32.mrb[12].mxu1 }
 0x213   : > { %3085 = vst [vmem:[%s4276_s30 + $0x38] sm:$0x33] %v3323_v14  ;;  %v2987_v59 = vadd.f32 %v3335_v51, %v4264_v61  ;;  %v3337_v53 = vadd.f32 %v2943_v58, %v4262_v55  ;;  %v2984_v15 = vadd.f32 %v4264_v61, %v2894_v60  ;;  %v2896_v38 = vpop.f32.mrb[13].mxu1 }
 0x214   : > { %v3006_v6 = vmax.f32 %v2986_v56, 0.0  ;;  %v2996_v11 = vadd.f32 %v3336_v57, %v4266_v16  ;;  %3084 = vst [vmem:[%s4276_s30 + $0x30] sm:$0x33] %v3322_v0  ;;  %v2985_v17 = vadd.f32 %v4264_v61, %v2896_v38  ;;  %v2898_v62 = vpop.f32.mrb[14].mxu1 }
 0x215   : > { %v3007_v29 = vmax.f32 %v2987_v59, 0.0  ;;  %v2997_v54 = vadd.f32 %v3337_v53, %v4266_v16  ;;  %v3004_v55 = vmax.f32 %v2984_v15, 0.0  ;;  %v2994_v5 = vadd.f32 %v4266_v16, %v2898_v62  ;;  %v2900_v20 = vpop.f32.mrb[15].mxu1 }
 0x216   : > { %v3016_v19 = vmax.f32 %v2996_v11, 0.0  ;;  %v3005_v4 = vmax.f32 %v2985_v17, 0.0  ;;  %v2995_v3 = vadd.f32 %v4266_v16, %v2900_v20 }
 0x217   : > { %v3320_v21 = vpack.c.bf16 %v3007_v29, %v3006_v6  ;;  %v3017_v18 = vmax.f32 %v2997_v54, 0.0  ;;  %v3014_v24 = vmax.f32 %v2994_v5, 0.0 }
 0x218   : > { %v3319_v23 = vpack.c.bf16 %v3005_v4, %v3004_v55  ;;  %v3015_v25 = vmax.f32 %v2995_v3, 0.0 }
 0x219   : > { %3082 = vst [vmem:[%s4276_s30 + $0x20] sm:$0xff] %v3320_v21  ;;  %v3325_v2 = vpack.c.bf16 %v3017_v18, %v3016_v19 }
 0x21a   : > { %3081 = vst [vmem:[%s4276_s30 + $0x18] sm:$0xff] %v3319_v23  ;;  %v3324_v61 = vpack.c.bf16 %v3015_v25, %v3014_v24 }
 0x21b   : > { %3087 = vst [vmem:[%s4276_s30 + $0x48] sm:$0x33] %v3325_v2 }
 0x21c   : > { %3086 = vst [vmem:[%s4276_s30 + $0x40] sm:$0x33] %v3324_v61 }
 0x21d PF: > { %s13_s14 = sadd.s32 1, %s3570_s14   ;;  %s4320_s12 = smov %s3566_s13 }
 0x21e   : > { %p10_p5 = scmp.ge.s32.totalorder %s13_s14, 4   ;;  %s4321_s13 = smov %s4323_s15 }
 0x220   :  { %12 = sbr.rel (!%p10_p5) target bundleno = 2 (0x2), region = 71 }

</bundles_post_ra>
